<compile_context>
chip_gen: v7x
topology: tpu7x:2x2x1
jax: 0.10.0
libtpu: 0.0.40
codegen_flags: <defaults>
</compile_context>

<pallas_src>
import math

import jax
import jax.numpy as jnp
from jax.experimental import pallas as pl
from jax.experimental.pallas import tpu as pltpu


def biaffine_kernel(x1_ref, x2_ref, wcat_ref, wl2t_ref, b_ref, o_ref):
    x1 = x1_ref[...]                      # (tn, D) f32
    x2 = x2_ref[...]                      # (tn, D) f32
    D = x1.shape[1]

    # One wide MXU push: x1 @ [W0 | W1 | Wl1]  ->  (tn, 2D + 2) in f32.
    r = jnp.dot(x1, wcat_ref[...], preferred_element_type=jnp.float32)

    # Bilinear forms: VPU multiply + lane reduction (XLU), one per output feature.
    b1 = jnp.sum(r[:, :D] * x2, axis=1, keepdims=True)          # (tn, 1)
    b2 = jnp.sum(r[:, D:2 * D] * x2, axis=1, keepdims=True)     # (tn, 1)

    # Linear part: x1 half already came out of the fused matmul; x2 half on the
    # VPU (a (D,2) MXU RHS would be ~1% lane utilization).
    lin1 = r[:, 2 * D:2 * D + 2]                                 # (tn, 2)
    l2_0 = jnp.sum(x2 * wl2t_ref[0:1, :], axis=1, keepdims=True)  # (tn, 1)
    l2_1 = jnp.sum(x2 * wl2t_ref[1:2, :], axis=1, keepdims=True)  # (tn, 1)

    # Direct sub-slice stores (no lane-axis concatenate). Bias scalars from SMEM.
    o_ref[:, 0:1] = (b1 + lin1[:, 0:1] + l2_0 + b_ref[0]).astype(o_ref.dtype)
    o_ref[:, 1:2] = (b2 + lin1[:, 1:2] + l2_1 + b_ref[1]).astype(o_ref.dtype)


def my_biaffine_attention(x1, x2, bil_w, lin_w, lin_b, *, tile_n=1024):
    """x1, x2: (N, D); bil_w: (2, D, D); lin_w: (2, 2D) [torch layout]; lin_b: (2,)."""
    N, D = x1.shape
    out_features = bil_w.shape[0]
    assert out_features == 2, "MyBilinear.forward hard-codes out_features == 2"

    # torch Linear: y = x @ W.T + b with W: (2, 2D).  Split into x1 / x2 halves.
    wl1 = lin_w.T[:D, :]                  # (D, 2)   acts on x1 -> fused into Wcat
    wl2t = lin_w[:, D:]                   # (2, D)   acts on x2 -> VPU rows

    # Fuse both bilinear weights + the x1 linear half into one resident MXU RHS.
    wcat = jnp.concatenate([bil_w[0], bil_w[1], wl1], axis=1)    # (D, 2D + 2)

    # Batch tiling: tile must be a multiple of 8 sublanes; pad N up to the grid.
    tn = max(8, min(int(tile_n), ((N + 7) // 8) * 8))
    tn = (tn // 8) * 8
    n_pad = pl.cdiv(N, tn) * tn
    if n_pad != N:
        pad = n_pad - N
        x1 = jnp.pad(x1, ((0, pad), (0, 0)))
        x2 = jnp.pad(x2, ((0, pad), (0, 0)))

    grid = (n_pad // tn,)

    out = pl.pallas_call(
        biaffine_kernel,
        out_shape=jax.ShapeDtypeStruct((n_pad, out_features), jnp.float32),
        grid_spec=pltpu.PrefetchScalarGridSpec(
            num_scalar_prefetch=0,
            grid=grid,
            in_specs=[
                pl.BlockSpec((tn, D), lambda i: (i, 0)),                 # x1 tile
                pl.BlockSpec((tn, D), lambda i: (i, 0)),                 # x2 tile
                pl.BlockSpec((D, 2 * D + out_features), lambda i: (0, 0)),  # Wcat resident
                pl.BlockSpec((out_features, D), lambda i: (0, 0)),       # wl2 rows resident
                pl.BlockSpec(memory_space=pltpu.MemorySpace.SMEM),       # bias scalars
            ],
            out_specs=pl.BlockSpec((tn, out_features), lambda i: (i, 0)),
        ),
        compiler_params=pltpu.CompilerParams(
            dimension_semantics=("parallel",),        # megacore sharding on v7x
            vmem_limit_bytes=32 * 1024 * 1024,        # tiles are tiny; fits all gens
        ),
    )(x1, x2, wcat, wl2t, lin_b)

    return out[:N]


def reference(x1, x2, bil_w, lin_w, lin_b):
    buff1 = jnp.sum((x1 @ bil_w[0]) * x2, axis=1, keepdims=True)
    buff2 = jnp.sum((x1 @ bil_w[1]) * x2, axis=1, keepdims=True)
    bil = jnp.concatenate((buff1, buff2), axis=-1)
    lin = jnp.concatenate((x1, x2), axis=-1) @ lin_w.T + lin_b
    return bil + lin


if __name__ == "__main__":
    key = jax.random.PRNGKey(0)
    N, D, OUT = 8, 32, 2  # batch, in_features, out_features (forward implies 2)

    k1, k2, k3, k4, k5, k6, k7 = jax.random.split(key, 7)
    x1 = jax.random.normal(k1, (N, D), dtype=jnp.float32)
    x2 = jax.random.normal(k2, (N, D), dtype=jnp.float32)

    # Deterministic parameter init mirroring the torch reset_parameters ranges.
    bound_bil = 1.0 / math.sqrt(D)
    bil_w = jax.random.uniform(k3, (OUT, D, D), minval=-bound_bil, maxval=bound_bil,
                               dtype=jnp.float32)
    bound_lin = 1.0 / math.sqrt(2 * D)
    lin_w = jax.random.uniform(k4, (OUT, 2 * D), minval=-bound_lin, maxval=bound_lin,
                               dtype=jnp.float32)
    lin_b = jax.random.uniform(k5, (OUT,), minval=-bound_lin, maxval=bound_lin,
                               dtype=jnp.float32)

    out = my_biaffine_attention(x1, x2, bil_w, lin_w, lin_b)
    out = jax.block_until_ready(out)
    ref = reference(x1, x2, bil_w, lin_w, lin_b)
    assert out.shape == (N, OUT)
    assert jnp.allclose(out, ref, atol=1e-5, rtol=1e-5), "mismatch vs JAX reference"

    # Second check: non-multiple-of-tile batch exercises the grid + padding path.
    N2 = 300
    x1b = jax.random.normal(k6, (N2, D), dtype=jnp.float32)
    x2b = jax.random.normal(k7, (N2, D), dtype=jnp.float32)
    out2 = jax.block_until_ready(
        my_biaffine_attention(x1b, x2b, bil_w, lin_w, lin_b, tile_n=128))
    ref2 = reference(x1b, x2b, bil_w, lin_w, lin_b)
    assert out2.shape == (N2, OUT)
    assert jnp.allclose(out2, ref2, atol=1e-5, rtol=1e-5), "mismatch (gridded) vs reference"

    print("KERNEL_OK")
</pallas_src>

<mosaic_0001>
module attributes {stable_mosaic.version = 11 : i64} {
  func.func @biaffine_kernel(%arg0: i32, %arg1: memref<8x32xf32, #tpu.memory_space<vmem>>, %arg2: memref<8x32xf32, #tpu.memory_space<vmem>>, %arg3: memref<32x66xf32, #tpu.memory_space<vmem>>, %arg4: memref<2x32xf32, #tpu.memory_space<vmem>>, %arg5: memref<2xf32, #tpu.memory_space<smem>>, %arg6: memref<8x2xf32, #tpu.memory_space<vmem>>) attributes {dimension_semantics = [#tpu.dimension_semantics<parallel>], iteration_bounds = array<i64: 1>, scalar_prefetch = 0 : i64, scratch_operands = 0 : i64, tpu.core_type = #tpu.core_type<tc>, window_params = [{transform_indices = @transform_0, window_bounds = array<i64: 8, 32>}, {transform_indices = @transform_1, window_bounds = array<i64: 8, 32>}, {pipeline_mode = #tpu.pipeline_mode<synchronous>, transform_indices = @transform_2, window_bounds = array<i64: 32, 66>}, {pipeline_mode = #tpu.pipeline_mode<synchronous>, transform_indices = @transform_3, window_bounds = array<i64: 2, 32>}, {transform_indices = @transform_4, window_bounds = array<i64: 2>}, {transform_indices = @transform_5, window_bounds = array<i64: 8, 2>}]} {
    %c0 = arith.constant 0 : index
    %c0_0 = arith.constant 0 : index
    %0 = vector.load %arg1[%c0, %c0_0] : memref<8x32xf32, #tpu.memory_space<vmem>>, vector<8x32xf32>
    %c0_1 = arith.constant 0 : index
    %c0_2 = arith.constant 0 : index
    %1 = vector.load %arg2[%c0_1, %c0_2] : memref<8x32xf32, #tpu.memory_space<vmem>>, vector<8x32xf32>
    %c0_3 = arith.constant 0 : index
    %c0_4 = arith.constant 0 : index
    %2 = vector.load %arg3[%c0_3, %c0_4] : memref<32x66xf32, #tpu.memory_space<vmem>>, vector<32x66xf32>
    %cst = arith.constant dense<0.000000e+00> : vector<8x66xf32>
    %3 = tpu.matmul %0, %2, %cst {dimension_numbers = #tpu.dot_dimension_numbers<[1], [0], [0], [1], [0, 0, 1, 1], [], []>} : vector<8x32xf32>, vector<32x66xf32>, vector<8x66xf32> -> vector<8x66xf32>
    %4 = vector.extract_strided_slice %3 {offsets = [0, 0], sizes = [8, 32], strides = [1, 1]} : vector<8x66xf32> to vector<8x32xf32>
    %5 = arith.mulf %4, %1 : vector<8x32xf32>
    %cst_5 = arith.constant dense<0.000000e+00> : vector<8xf32>
    %6 = vector.multi_reduction <add>, %5, %cst_5 [1] : vector<8x32xf32> to vector<8xf32>
    %7 = vector.shape_cast %6 : vector<8xf32> to vector<8x1xf32>
    %8 = vector.extract_strided_slice %3 {offsets = [0, 32], sizes = [8, 32], strides = [1, 1]} : vector<8x66xf32> to vector<8x32xf32>
    %9 = arith.mulf %8, %1 : vector<8x32xf32>
    %cst_6 = arith.constant dense<0.000000e+00> : vector<8xf32>
    %10 = vector.multi_reduction <add>, %9, %cst_6 [1] : vector<8x32xf32> to vector<8xf32>
    %11 = vector.shape_cast %10 : vector<8xf32> to vector<8x1xf32>
    %12 = vector.extract_strided_slice %3 {offsets = [0, 64], sizes = [8, 2], strides = [1, 1]} : vector<8x66xf32> to vector<8x2xf32>
    %c0_7 = arith.constant 0 : index
    %c0_8 = arith.constant 0 : index
    %13 = vector.load %arg4[%c0_7, %c0_8] : memref<2x32xf32, #tpu.memory_space<vmem>>, vector<1x32xf32>
    %14 = vector.broadcast %13 : vector<1x32xf32> to vector<8x32xf32>
    %15 = arith.mulf %1, %14 : vector<8x32xf32>
    %cst_9 = arith.constant dense<0.000000e+00> : vector<8xf32>
    %16 = vector.multi_reduction <add>, %15, %cst_9 [1] : vector<8x32xf32> to vector<8xf32>
    %17 = vector.shape_cast %16 : vector<8xf32> to vector<8x1xf32>
    %c1 = arith.constant 1 : index
    %c0_10 = arith.constant 0 : index
    %18 = vector.load %arg4[%c1, %c0_10] : memref<2x32xf32, #tpu.memory_space<vmem>>, vector<1x32xf32>
    %19 = vector.broadcast %18 : vector<1x32xf32> to vector<8x32xf32>
    %20 = arith.mulf %1, %19 : vector<8x32xf32>
    %cst_11 = arith.constant dense<0.000000e+00> : vector<8xf32>
    %21 = vector.multi_reduction <add>, %20, %cst_11 [1] : vector<8x32xf32> to vector<8xf32>
    %22 = vector.shape_cast %21 : vector<8xf32> to vector<8x1xf32>
    %23 = vector.extract_strided_slice %12 {offsets = [0, 0], sizes = [8, 1], strides = [1, 1]} : vector<8x2xf32> to vector<8x1xf32>
    %24 = arith.addf %7, %23 : vector<8x1xf32>
    %25 = arith.addf %24, %17 : vector<8x1xf32>
    %c0_12 = arith.constant 0 : index
    %26 = memref.load %arg5[%c0_12] : memref<2xf32, #tpu.memory_space<smem>>
    %27 = vector.broadcast %26 : f32 to vector<8x1xf32>
    %28 = arith.addf %25, %27 : vector<8x1xf32>
    %c0_13 = arith.constant 0 : index
    %c0_14 = arith.constant 0 : index
    %29 = vector.load %arg6[%c0_13, %c0_14] : memref<8x2xf32, #tpu.memory_space<vmem>>, vector<8x1xf32>
    tpu.vector_store %arg6[%c0_13, %c0_14], %28 {strides = array<i32>} : memref<8x2xf32, #tpu.memory_space<vmem>>, vector<8x1xf32>,
    %30 = vector.extract_strided_slice %12 {offsets = [0, 1], sizes = [8, 1], strides = [1, 1]} : vector<8x2xf32> to vector<8x1xf32>
    %31 = arith.addf %11, %30 : vector<8x1xf32>
    %32 = arith.addf %31, %22 : vector<8x1xf32>
    %c1_15 = arith.constant 1 : index
    %33 = memref.load %arg5[%c1_15] : memref<2xf32, #tpu.memory_space<smem>>
    %34 = vector.broadcast %33 : f32 to vector<8x1xf32>
    %35 = arith.addf %32, %34 : vector<8x1xf32>
    %c0_16 = arith.constant 0 : index
    %c1_17 = arith.constant 1 : index
    %36 = vector.load %arg6[%c0_16, %c1_17] : memref<8x2xf32, #tpu.memory_space<vmem>>, vector<8x1xf32>
    tpu.vector_store %arg6[%c0_16, %c1_17], %35 {strides = array<i32>} : memref<8x2xf32, #tpu.memory_space<vmem>>, vector<8x1xf32>,
    return
  }
  func.func @transform_0(%arg0: i32) -> (i32, i32) {
    %c0_i32 = arith.constant 0 : i32
    %c0_i32_0 = arith.constant 0 : i32
    return %arg0, %c0_i32 : i32, i32
  }
  func.func @transform_1(%arg0: i32) -> (i32, i32) {
    %c0_i32 = arith.constant 0 : i32
    %c0_i32_0 = arith.constant 0 : i32
    return %arg0, %c0_i32 : i32, i32
  }
  func.func @transform_2(%arg0: i32) -> (i32, i32) {
    %c0_i32 = arith.constant 0 : i32
    %c0_i32_0 = arith.constant 0 : i32
    %c0_i32_1 = arith.constant 0 : i32
    return %c0_i32, %c0_i32_0 : i32, i32
  }
  func.func @transform_3(%arg0: i32) -> (i32, i32) {
    %c0_i32 = arith.constant 0 : i32
    %c0_i32_0 = arith.constant 0 : i32
    %c0_i32_1 = arith.constant 0 : i32
    return %c0_i32, %c0_i32_0 : i32, i32
  }
  func.func @transform_4(%arg0: i32) -> i32 {
    %c0_i32 = arith.constant 0 : i32
    %c0_i32_0 = arith.constant 0 : i32
    return %c0_i32 : i32
  }
  func.func @transform_5(%arg0: i32) -> (i32, i32) {
    %c0_i32 = arith.constant 0 : i32
    %c0_i32_0 = arith.constant 0 : i32
    return %arg0, %c0_i32 : i32, i32
  }
}

</mosaic_0001>

<bundles_post_ra>
// kernel: tpu_custom_call.1
= control target key start
LH: loop header
LB: loop body
LE: loop exit
PB: predicated region body
PF: predicated region fallthrough
CT: control target
= control target key end

     0   :  { %10 = vsyncpa [#allocation3], 0  ;;  %s433_s0 = inlined_call_operand.hbm [shape: f32[8,32], index: 0, kind: input, shape index: {}]   ;;  %s434_s1 = inlined_call_operand.hbm [shape: f32[8,32], index: 1, kind: input, shape index: {}]   ;;  %s435_s2 = inlined_call_operand.hbm [shape: f32[32,66], index: 2, kind: input, shape index: {}]   ;;  %s436_s3 = inlined_call_operand.vmem [shape: f32[2,32], index: 3, kind: input, shape index: {}]   ;;  %s437_s4 = inlined_call_operand.vmem [shape: f32[2], index: 4, kind: input, shape index: {}]   ;;  %s438_s5 = inlined_call_operand.vmem [shape: f32[8,2], index: 5, kind: output, shape index: {}]  }
   0x1   :  { %11 = vsyncpa [#allocation6], 0 }
   0x2   :  { %12 = vsyncpa [#allocation4], 0  ;;  %s335_s18 = smov [#allocation5]   ;;  %s336_s20 = smov [#allocation2]  }
   0x3   :  { %s29_s19 = sshll.u32 %s335_s18, 4  ;;  %s19_s21 = sshll.u32 %s336_s20, 4  ;;  %s30_s19 = int_to_ptr.vmem [resolvable:$true] %s29_s19  ;;  %s20_s21 = int_to_ptr.vmem [resolvable:$true] %s19_s21 }
   0x4   :  { %s251_s24 = scalar_lea.hbm %s434_s1, 128 }
   0x5   :  { %p252_p0 = scmp.ne.s32.totalorder %s434_s1, %s251_s24  ;;  %p255_p1 = scmp.lt.u32.totalorder %s251_s24, %s434_s1 }
   0x7   :  { %p257_p2 = pnand %p255_p1, %p252_p0 }
   0x9   :  { %260 = shalt.err (!%p257_p2)
}
   0xa   :  { %s261_s29 = scalar_lea.vmem %s30_s19, 128  ;;  %p266_p4 = scmp.lt.s32.totalorder %s30_s19, %s30_s19 }
   0xb   :  { %p262_p3 = scmp.ne.s32.totalorder %s30_s19, %s261_s29  ;;  %p267_p5 = scmp.lt.s32.totalorder %s261_s29, %s261_s29 }
   0xd   :  { %p268_p6 = por %p267_p5, %p266_p4 }
   0xf   :  { %p269_p7 = pnand %p268_p6, %p262_p3 }
  0x11   :  { %272 = shalt.err (!%p269_p7)
}
  0x12   :  { %32 = dma.hbm_to_vmem [thread:$0]  %s434_s1, 128, %s30_s19, [#allocation6]  }
  0x13   :  { %s273_s9 = scalar_lea.hbm %s433_s0, 128 }
  0x14   :  { %p274_p8 = scmp.ne.s32.totalorder %s433_s0, %s273_s9  ;;  %p277_p9 = scmp.lt.u32.totalorder %s273_s9, %s433_s0 }
  0x16   :  { %p279_p10 = pnand %p277_p9, %p274_p8 }
  0x18   :  { %282 = shalt.err (!%p279_p10)
}
  0x19   :  { %s283_s14 = scalar_lea.vmem %s20_s21, 128  ;;  %p288_p12 = scmp.lt.s32.totalorder %s20_s21, %s20_s21 }
  0x1a   :  { %p284_p11 = scmp.ne.s32.totalorder %s20_s21, %s283_s14  ;;  %p289_p13 = scmp.lt.s32.totalorder %s283_s14, %s283_s14 }
  0x1c   :  { %p290_p0 = por %p289_p13, %p288_p12 }
  0x1e   :  { %p291_p1 = pnand %p290_p0, %p284_p11 }
  0x20   :  { %294 = shalt.err (!%p291_p1)
}
  0x21   :  { %22 = dma.hbm_to_vmem [thread:$0]  %s433_s0, 128, %s20_s21, [#allocation3]  }
  0x22   :  { %s337_s16 = smov [#allocation7]   ;;  %s53_s20 = sshll.u32 %s437_s4, 4  ;;  %s54_s20 = int_to_ptr.vmem [resolvable:$true] %s53_s20 }
  0x23   :  { %s38_s17 = sshll.u32 %s337_s16, 4  ;;  %s295_s24 = scalar_lea.hbm %s435_s2, 512  ;;  %s39_s17 = int_to_ptr.vmem [resolvable:$true] %s38_s17 }
  0x24   :  { %p296_p2 = scmp.ne.s32.totalorder %s435_s2, %s295_s24  ;;  %p299_p3 = scmp.lt.u32.totalorder %s295_s24, %s435_s2 }
  0x26   :  { %p301_p4 = pnand %p299_p3, %p296_p2 }
  0x28   :  { %304 = shalt.err (!%p301_p4)
}
  0x29   :  { %s305_s0 = scalar_lea.vmem %s39_s17, 512  ;;  %p310_p6 = scmp.lt.s32.totalorder %s39_s17, %s39_s17 }
  0x2a   :  { %p306_p5 = scmp.ne.s32.totalorder %s39_s17, %s305_s0  ;;  %p311_p7 = scmp.lt.s32.totalorder %s305_s0, %s305_s0 }
  0x2c   :  { %p312_p8 = por %p311_p7, %p310_p6 }
  0x2e   :  { %p313_p9 = pnand %p312_p8, %p306_p5 }
  0x30   :  { %316 = shalt.err (!%p313_p9)
}
  0x31   :  { %s338_s4 = smov 128   ;;  %s339_s21 = smov 8  }
  0x32   :  { %44 = dma.hbm_to_vmem [thread:$0]  %s435_s2, 512, %s39_s17, [#allocation6], %s338_s4, %s338_s4, %s339_s21  }
  0x33   :  { %s317_s6 = scalar_lea.vmem %s54_s20, 16  ;;  %p322_p11 = scmp.lt.s32.totalorder %s54_s20, %s54_s20 }
  0x34   :  { %p318_p10 = scmp.ne.s32.totalorder %s54_s20, %s317_s6  ;;  %p323_p12 = scmp.lt.s32.totalorder %s317_s6, %s317_s6 }
  0x36   :  { %p324_p13 = por %p323_p12, %p322_p11 }
  0x38   :  { %p325_p0 = pnand %p324_p13, %p318_p10 }
  0x3a   :  { %328 = shalt.err (!%p325_p0)
}
  0x3b   :  { %s340_s7 = smov [#allocation8]  }
  0x3c   :  { %56 = dma.vmem_to_smem %s54_s20, 16, %s340_s7, [#allocation4]  }
  0x3d   :  { %329 = dma.done.wait [#allocation3], 128  }
  0x3e   :  { %330 = vsyncadd [#allocation3], 4294967168 }
  0x3f   :  { %331 = dma.done.wait [#allocation6], 640  }
  0x40   :  { %332 = vsyncadd [#allocation6], 4294966656 }
  0x41   :  { %333 = dma.done.wait [#allocation4], 16  }
  0x42   :  { %334 = vsyncadd [#allocation4], 4294967280 }
  0x43   :  { %69 = sfence }
  0x44   :  { %v72_v0 = vld [vmem:[#allocation7] sm:$0xff]  ;;  %v73_v1 = vld [vmem:[#allocation7 + $0x8] sm:$0xff]  ;;  %v74_v2 = vld [vmem:[#allocation7 + $0x10] sm:$0xff]  ;;  %v341_v3 = vmov 0.0|0.0   ;;  %vm342_vm0 = vmmov 0   ;;  %v343_v6 = vmov 0.0  }
  0x45   :  { %233 = vmatprep.subr.bf16.mxu0 %v341_v3  ;;  %v234_v4 = vpack.c.bf16 %v73_v1, %v72_v0  ;;  %v75_v5 = vld [vmem:[#allocation7 + $0x18] sm:$0xff]  ;;  %230 = vmatprep.mubr.msk.f32.mxu0 %vm342_vm0, %v343_v6  ;;  %s344_s2 = smov 32   ;;  %v70_v9 = vld [vmem:[#allocation2] sm:$0xff]  ;;  %vm76_vm1 = vcmask 261120   ;;  %s345_s8 = smov 96   ;;  %vm193_vm2 = vcmask 7168  }
  0x46   :  { %v71_v7 = vld [vmem:[#allocation5] sm:$0xff]  ;;  %v237_v8 = vpack.c.bf16 %v75_v5, %v74_v2  ;;  %v214_v16 = vld [vmem:[%s436_s3] ss:$0 sm:$0xff]  ;;  %v215_v19 = vld [vmem:[%s436_s3 + $0x1] ss:$0 sm:$0xff]  ;;  %s186_s13 = sld [smem:[#allocation8]] }
  0x47   :  { %155 = vrot.lane.b32.xlu0 %v71_v7, %s344_s2  ;;  %235 = vmatpush3.bf16.msra.mxu0 %v234_v4  ;;  %v171_v17 = vmul.f32 %v214_v16, %v71_v7  ;;  %v180_v20 = vmul.f32 %v215_v19, %v71_v7  ;;  %s346_s14 = smov 64   ;;  %s216_s1 = sld [smem:[#allocation8 + $0x1]]  ;;  %vm204_vm3 = vcmask 15368  }
  0x48   :  { %236 = vmatprep.subr.bf16.mxu0 %v341_v3 }
  0x49   :  { %v172_v18 = vsel %vm76_vm1, %v171_v17, 0.0  ;;  %v181_v23 = vsel %vm76_vm1, %v180_v20, 0.0 }
  0x4b   :  { %238 = vmatpush3.bf16.msra.mxu0 %v237_v8 }
  0x4c   :  { %v187_v26 = vstv %s186_s13 }
  0x4d   :  { %v198_v32 = vstv %s216_s1 }
  0x4e   :  { %231 = vmatmul.mubr.msk.f32.vlgmr.msra.gmra.mrb[0].mxu0 %vm76_vm1, %v70_v9 }
  0xb9   :  { %v156_v10 = vpop.permute.xlu0 %155 }
 0x121   :  { %v146_v11 = vpop.f32.mrb[0].mxu0 }
 0x122   :  { %v232_v12 = vpop.f32.mrb[1].mxu0  ;;  %v158_v13 = vmul.f32 %v156_v10, %v146_v11  ;;  %v150_v14 = vmul.f32 %v146_v11, %v71_v7 }
 0x124   :  { %160 = vrot.lane.b32.xlu0 %v158_v13, %s345_s8  ;;  %v151_v15 = vsel %vm76_vm1, %v150_v14, 0.0 }
 0x125   :  { %152 = vadd.xlane.f32.xlu1 %v151_v15 }
 0x143   :  { %173 = vadd.xlane.f32.xlu0 %v172_v18 }
 0x196   :  { %v161_v21 = vpop.permute.xlu0 %160 }
 0x197   :  { %v163_v22 = vsel %vm76_vm1, %v161_v21, 0.0 }
 0x198   :  { %164 = vadd.xlane.f32.xlu1 %v163_v22 }
 0x19c   :  { %182 = vadd.xlane.f32.xlu1 %v181_v23 }
 0x1b2   :  { %v153_v24 = vpop.xlane.xlu1 %152 }
 0x1b3   :  { %v184_v25 = vadd.f32 %v153_v24, %v146_v11 }
 0x1d0   :  { %v174_v27 = vpop.xlane.xlu0 %173 }
 0x1d1   :  { %v185_v28 = vadd.f32 %v184_v25, %v174_v27 }
 0x1d3   :  { %v188_v29 = vadd.f32 %v187_v26, %v185_v28 }
 0x1d5   :  { %190 = vrot.lane.b32.xlu1 %v188_v29, %s346_s14 }
 0x225   :  { %v165_v30 = vpop.xlane.xlu1 %164 }
 0x226   :  { %v195_v31 = vadd.f32 %v165_v30, %v146_v11 }
 0x229   :  { %v183_v33 = vpop.xlane.xlu1 %182 }
 0x22a   :  { %v196_v34 = vadd.f32 %v195_v31, %v183_v33 }
 0x22c   :  { %v199_v35 = vadd.f32 %v198_v32, %v196_v34 }
 0x22e   :  { %201 = vrot.lane.b32.xlu1 %v199_v35, %s346_s14 }
 0x247   :  { %v191_v36 = vpop.permute.xlu1 %190 }
 0x248   :  { %194 = vst.msk [vmem:[%s438_s5] sm:$0xff] %vm193_vm2, %v191_v36 }
 0x2a0   :  { %v202_v37 = vpop.permute.xlu1 %201 }
 0x2a1   :  { %205 = vst.msk [vmem:[%s438_s5] sm:$0xff] %vm204_vm3, %v202_v37 }
 0x2a2   :  { %210 = vsyncpa [#allocation3], 1 }
 0x2a3   :  { %211 = vsyncpa [#allocation6], 1 }
 0x2a4   :  { %212 = vsyncpa [#allocation4], 1 }

</bundles_post_ra>
